<compile_context>
chip_gen: v5e
topology: v5e:2x2
jax: 0.10.0
libtpu: 0.0.40
codegen_flags: <defaults>
</compile_context>

<pallas_src>
import math

import jax
import jax.numpy as jnp
from jax.experimental import pallas as pl
from jax.experimental.pallas import tpu as pltpu

# ----------------------------- problem sizes ---------------------------------
B = 2            # batch
CM = 2           # mask channels (model.mask_channels)
CC = 1           # cond image channels (model.input_img_channels)
H = W = Z = 8    # image_size (3-D volume)
S = H * W * Z    # flattened spatial = 512
LANES = 128      # lane width
HD = 32          # hidden width of synthetic denoiser
TIMESTEPS = 1000


# ------------------------- diffusion schedule (glue) --------------------------
def cosine_beta_schedule(timesteps, s=0.008):
    steps = timesteps + 1
    x = jnp.linspace(0.0, float(timesteps), steps, dtype=jnp.float32)
    alphas_cumprod = jnp.cos(((x / timesteps) + s) / (1.0 + s) * jnp.pi * 0.5) ** 2
    alphas_cumprod = alphas_cumprod / alphas_cumprod[0]
    betas = 1.0 - (alphas_cumprod[1:] / alphas_cumprod[:-1])
    return jnp.clip(betas, 0.0, 0.999)


def make_diffusion_buffers(timesteps=TIMESTEPS):
    betas = cosine_beta_schedule(timesteps)
    alphas = 1.0 - betas
    alphas_cumprod = jnp.cumprod(alphas)
    sqrt_alphas_cumprod = jnp.sqrt(alphas_cumprod).astype(jnp.float32)
    sqrt_one_minus_alphas_cumprod = jnp.sqrt(1.0 - alphas_cumprod).astype(jnp.float32)
    return sqrt_alphas_cumprod, sqrt_one_minus_alphas_cumprod


# ----------------------- synthetic denoiser parameters ------------------------
def make_model_params(key):
    k1, k2, k3, k4, k5 = jax.random.split(key, 5)
    return dict(
        w1x=jax.random.normal(k1, (HD, CM), jnp.float32) * 0.2,
        w1c=jax.random.normal(k2, (HD, CC), jnp.float32) * 0.2,
        w2=jax.random.normal(k3, (CM, HD), jnp.float32) * 0.2,
        b1=jax.random.normal(k4, (HD,), jnp.float32) * 0.1,
        wt=jax.random.normal(k5, (HD, HD), jnp.float32) * 0.2,
    )


def time_embedding(t, dim=HD):
    half = dim // 2
    freqs = jnp.exp(-math.log(10000.0) * jnp.arange(half, dtype=jnp.float32) / half)
    args = t.astype(jnp.float32)[:, None] * freqs[None, :]
    return jnp.concatenate([jnp.sin(args), jnp.cos(args)], axis=-1)  # (B, HD)


# ------------------------------ chip gating -----------------------------------
def _batches_per_program():
    """nb=1 (grid=(B,), one batch per TensorCore) on 2-TC v7x;
    nb=B (one program, no per-step grid overhead) on single-TC v5e/v6e."""
    try:
        kind = (jax.devices()[0].device_kind or "").lower()
        if "v7" in kind:
            return 1
    except Exception:
        pass
    return B


# --------------------------------- kernel -------------------------------------
def make_loss_kernel(nb):
    inv_n = 1.0 / float(CM * S)

    def medsegdiff_loss_kernel(
        coefs_ref,                                  # SMEM (B, 3): [2*sqrt_ac, sqrt_1m_ac, -sqrt_ac]
        x_ref, nz_ref, cond_ref, temb_ref,          # VMEM blocks for nb batches
        w1_ref, w2_ref,                             # VMEM weights
        loss_ref,                                   # (nb, 1, 128) lane-partial sums
    ):
        base = pl.program_id(0) * nb
        w2 = w2_ref[...]                            # (CM, HD)
        for i in range(nb):                         # static unroll over batches in this program
            b = base + i
            a2 = coefs_ref[b, 0]                    # 2 * sqrt_alphas_cumprod[t_b]
            bc = coefs_ref[b, 1]                    # sqrt_one_minus_alphas_cumprod[t_b]
            bias = coefs_ref[b, 2]                  # -sqrt_alphas_cumprod[t_b]

            # normalize_to_neg_one_to_one + q_sample fused: xt = (2x-1)*a + nz*bc
            nz = nz_ref[i]                          # (CM, S)
            xt = x_ref[i] * a2 + nz * bc + bias     # (CM, S)
            cd = cond_ref[i]                        # (CC, S)

            # Layer 1: contraction dim CM+CC=3 -> VPU broadcast-FMAs; the
            # (HD, 1) time-embedding column is splatted across lanes as the
            # accumulator init (no (HD, S) slab streamed from HBM).
            h = temb_ref[i] + w1_ref[0] * xt[0:1, :]            # (HD, S)
            for c in range(1, CM):
                h = h + w1_ref[c] * xt[c:c + 1, :]
            for c in range(CC):
                h = h + w1_ref[CM + c] * cd[c:c + 1, :]
            h = jnp.maximum(h, 0.0)

            # Layer 2 (K=HD=32) on the MXU.
            out = jnp.dot(w2, h, preferred_element_type=jnp.float32)  # (CM, S)

            # objective == 'pred_noise' -> target is the noise; per-batch mean MSE.
            err = out - nz
            err2 = err * err                        # (CM, S)
            part = err2[:, 0:LANES]
            for t in range(1, S // LANES):          # fold lane-tiles (static slices)
                part = part + err2[:, t * LANES:(t + 1) * LANES]
            loss_ref[i] = jnp.sum(part, axis=0, keepdims=True) * inv_n   # (1, 128)

    return medsegdiff_loss_kernel


def run_loss_kernel(coefs, x_flat, nz_flat, cond_flat, temb_col, w1_cols, w2):
    nb = _batches_per_program()
    grid = (B // nb,)
    grid_spec = pltpu.PrefetchScalarGridSpec(
        num_scalar_prefetch=1,
        grid=grid,
        in_specs=[
            pl.BlockSpec((nb, CM, S), lambda g, coefs: (g, 0, 0)),        # x_start
            pl.BlockSpec((nb, CM, S), lambda g, coefs: (g, 0, 0)),        # noise
            pl.BlockSpec((nb, CC, S), lambda g, coefs: (g, 0, 0)),        # cond (bcast over Z)
            pl.BlockSpec((nb, HD, 1), lambda g, coefs: (g, 0, 0)),        # time-emb column
            pl.BlockSpec((CM + CC, HD, 1), lambda g, coefs: (0, 0, 0)),   # layer-1 weight cols
            pl.BlockSpec((CM, HD), lambda g, coefs: (0, 0)),              # W2
        ],
        out_specs=pl.BlockSpec((nb, 1, LANES), lambda g, coefs: (g, 0, 0)),
    )
    out = pl.pallas_call(
        make_loss_kernel(nb),
        out_shape=jax.ShapeDtypeStruct((B, 1, LANES), jnp.float32),
        grid_spec=grid_spec,
        compiler_params=pltpu.CompilerParams(
            dimension_semantics=("parallel",) if nb == 1 else ("arbitrary",)),
    )(coefs, x_flat, nz_flat, cond_flat, temb_col, w1_cols, w2)
    # finish the 128-lane partial sums in glue (negligible XLA reduce).
    return out.sum(axis=(1, 2))


# -------------------------- forward (MedSegDiff.forward) ----------------------
def medsegdiff_forward(img, cond_img, times, noise, params, sqrt_ac, sqrt_omac):
    """img: (B, CM, H, W, Z); cond_img: (B, CC, H, W); returns (loss[B], times)."""
    a = sqrt_ac[times]
    bc = sqrt_omac[times]
    # fold normalize (x*2-1) into q_sample: xt = x*(2a) + nz*bc + (-a)
    coefs = jnp.stack([2.0 * a, bc, -a], axis=1).astype(jnp.float32)      # (B, 3)

    x_flat = img.reshape(B, CM, S).astype(jnp.float32)
    nz_flat = noise.reshape(B, CM, S).astype(jnp.float32)
    # TODO(synk): at realistic volume sizes keep cond as (B, CC, H*W) and map every
    # Z/S tile to the same (H*W) block via the index_map instead of materializing
    # the Z-broadcast in HBM; at 8^3 this broadcast is only 2 KB/batch.
    cond_flat = jnp.broadcast_to(
        cond_img[..., None], (B, CC, H, W, Z)).reshape(B, CC, S).astype(jnp.float32)

    emb = time_embedding(times)                                    # (B, HD)
    temb = emb @ params["wt"].T + params["b1"][None, :]            # (B, HD)
    temb_col = temb[:, :, None].astype(jnp.float32)                # (B, HD, 1)

    # layer-1 weight columns pre-split along the leading axis: [w1x_0, w1x_1, w1c_0]
    w1_cat = jnp.concatenate([params["w1x"], params["w1c"]], axis=1)      # (HD, CM+CC)
    w1_cols = jnp.transpose(w1_cat)[:, :, None].astype(jnp.float32)       # (CM+CC, HD, 1)

    loss = run_loss_kernel(coefs, x_flat, nz_flat, cond_flat, temb_col,
                           w1_cols, params["w2"].astype(jnp.float32))
    return loss, times


# ------------------------------ pure-JAX reference ----------------------------
def reference_forward(img, cond_img, times, noise, params, sqrt_ac, sqrt_omac):
    hp = jax.lax.Precision.HIGHEST   # exact f32 contractions in the reference
    a = sqrt_ac[times][:, None, None]
    bc = sqrt_omac[times][:, None, None]
    x_flat = img.reshape(B, CM, S) * 2.0 - 1.0
    nz_flat = noise.reshape(B, CM, S)
    cond_flat = jnp.broadcast_to(cond_img[..., None], (B, CC, H, W, Z)).reshape(B, CC, S)
    xt = a * x_flat + bc * nz_flat
    emb = time_embedding(times)
    temb = (emb @ params["wt"].T + params["b1"][None, :])[:, :, None]
    h = (jnp.einsum("hc,bcs->bhs", params["w1x"], xt, precision=hp)
         + jnp.einsum("hc,bcs->bhs", params["w1c"], cond_flat, precision=hp) + temb)
    h = jnp.maximum(h, 0.0)
    out = jnp.einsum("ch,bhs->bcs", params["w2"], h, precision=hp)
    return jnp.mean((out - nz_flat) ** 2, axis=(1, 2))


# ----------------------------------- main --------------------------------------
if __name__ == "__main__":
    key = jax.random.PRNGKey(0)
    k_img, k_cond, k_noise, k_t, k_param = jax.random.split(key, 5)

    img = jax.random.uniform(k_img, (B, CM, H, W, Z), jnp.float32)      # mask in [0,1]
    cond_img = jax.random.normal(k_cond, (B, CC, H, W), jnp.float32)    # 2-D x-ray cond
    noise = jax.random.normal(k_noise, (B, CM, H, W, Z), jnp.float32)
    # TODO(synk): get_time()'s stateful without-replacement time pool (python random)
    # is replaced by a deterministic uniform draw over [0, num_timesteps).
    times = jax.random.randint(k_t, (B,), 0, TIMESTEPS)

    params = make_model_params(k_param)
    sqrt_ac, sqrt_omac = make_diffusion_buffers()

    loss, t_out = medsegdiff_forward(img, cond_img, times, noise, params, sqrt_ac, sqrt_omac)
    loss = jax.block_until_ready(loss)

    ref = reference_forward(img, cond_img, times, noise, params, sqrt_ac, sqrt_omac)
    assert loss.shape == (B,) and t_out.shape == (B,)
    # Expected agreement ~1e-6; rtol cushion covers MXU f32-matmul pass-count choices.
    assert jnp.allclose(loss, ref, rtol=2e-3, atol=1e-5), (loss, ref)

    print("KERNEL_OK")
</pallas_src>

<mosaic_0001>
module attributes {stable_mosaic.version = 11 : i64} {
  func.func @medsegdiff_loss_kernel(%arg0: i32, %arg1: memref<2x3xf32, #tpu.memory_space<smem>>, %arg2: memref<2x2x512xf32, #tpu.memory_space<vmem>>, %arg3: memref<2x2x512xf32, #tpu.memory_space<vmem>>, %arg4: memref<2x1x512xf32, #tpu.memory_space<vmem>>, %arg5: memref<2x32x1xf32, #tpu.memory_space<vmem>>, %arg6: memref<3x32x1xf32, #tpu.memory_space<vmem>>, %arg7: memref<2x32xf32, #tpu.memory_space<vmem>>, %arg8: memref<2x1x128xf32, #tpu.memory_space<vmem>>) attributes {dimension_semantics = [#tpu.dimension_semantics<arbitrary>], iteration_bounds = array<i64: 1>, scalar_prefetch = 1 : i64, scratch_operands = 0 : i64, tpu.core_type = #tpu.core_type<tc>, window_params = [{transform_indices = @transform_0, window_bounds = array<i64: 2, 2, 512>}, {transform_indices = @transform_1, window_bounds = array<i64: 2, 2, 512>}, {transform_indices = @transform_2, window_bounds = array<i64: 2, 1, 512>}, {transform_indices = @transform_3, window_bounds = array<i64: 2, 32, 1>}, {pipeline_mode = #tpu.pipeline_mode<synchronous>, transform_indices = @transform_4, window_bounds = array<i64: 3, 32, 1>}, {pipeline_mode = #tpu.pipeline_mode<synchronous>, transform_indices = @transform_5, window_bounds = array<i64: 2, 32>}, {transform_indices = @transform_6, window_bounds = array<i64: 2, 1, 128>}]} {
    %c2_i32 = arith.constant 2 : i32
    %0 = arith.muli %arg0, %c2_i32 : i32
    %c0 = arith.constant 0 : index
    %c0_0 = arith.constant 0 : index
    %1 = vector.load %arg7[%c0, %c0_0] : memref<2x32xf32, #tpu.memory_space<vmem>>, vector<2x32xf32>
    %c0_i32 = arith.constant 0 : i32
    %2 = arith.addi %0, %c0_i32 : i32
    %3 = arith.index_cast %2 : i32 to index
    %c0_1 = arith.constant 0 : index
    %4 = memref.load %arg1[%3, %c0_1] : memref<2x3xf32, #tpu.memory_space<smem>>
    %5 = arith.index_cast %2 : i32 to index
    %c1 = arith.constant 1 : index
    %6 = memref.load %arg1[%5, %c1] : memref<2x3xf32, #tpu.memory_space<smem>>
    %7 = arith.index_cast %2 : i32 to index
    %c2 = arith.constant 2 : index
    %8 = memref.load %arg1[%7, %c2] : memref<2x3xf32, #tpu.memory_space<smem>>
    %c0_2 = arith.constant 0 : index
    %c0_3 = arith.constant 0 : index
    %c0_4 = arith.constant 0 : index
    %9 = vector.load %arg3[%c0_2, %c0_3, %c0_4] : memref<2x2x512xf32, #tpu.memory_space<vmem>>, vector<1x2x512xf32>
    %10 = vector.shape_cast %9 : vector<1x2x512xf32> to vector<2x512xf32>
    %c0_5 = arith.constant 0 : index
    %c0_6 = arith.constant 0 : index
    %c0_7 = arith.constant 0 : index
    %11 = vector.load %arg2[%c0_5, %c0_6, %c0_7] : memref<2x2x512xf32, #tpu.memory_space<vmem>>, vector<1x2x512xf32>
    %12 = vector.shape_cast %11 : vector<1x2x512xf32> to vector<2x512xf32>
    %13 = vector.broadcast %4 : f32 to vector<2x512xf32>
    %14 = arith.mulf %12, %13 : vector<2x512xf32>
    %15 = vector.broadcast %6 : f32 to vector<2x512xf32>
    %16 = arith.mulf %10, %15 : vector<2x512xf32>
    %17 = arith.addf %14, %16 : vector<2x512xf32>
    %18 = vector.broadcast %8 : f32 to vector<2x512xf32>
    %19 = arith.addf %17, %18 : vector<2x512xf32>
    %c0_8 = arith.constant 0 : index
    %c0_9 = arith.constant 0 : index
    %c0_10 = arith.constant 0 : index
    %20 = vector.load %arg4[%c0_8, %c0_9, %c0_10] : memref<2x1x512xf32, #tpu.memory_space<vmem>>, vector<1x1x512xf32>
    %21 = vector.shape_cast %20 : vector<1x1x512xf32> to vector<1x512xf32>
    %c0_11 = arith.constant 0 : index
    %c0_12 = arith.constant 0 : index
    %c0_13 = arith.constant 0 : index
    %22 = vector.load %arg5[%c0_11, %c0_12, %c0_13] : memref<2x32x1xf32, #tpu.memory_space<vmem>>, vector<1x32x1xf32>
    %23 = vector.shape_cast %22 : vector<1x32x1xf32> to vector<32x1xf32>
    %c0_14 = arith.constant 0 : index
    %c0_15 = arith.constant 0 : index
    %c0_16 = arith.constant 0 : index
    %24 = vector.load %arg6[%c0_14, %c0_15, %c0_16] : memref<3x32x1xf32, #tpu.memory_space<vmem>>, vector<1x32x1xf32>
    %25 = vector.shape_cast %24 : vector<1x32x1xf32> to vector<32x1xf32>
    %26 = vector.extract_strided_slice %19 {offsets = [0, 0], sizes = [1, 512], strides = [1, 1]} : vector<2x512xf32> to vector<1x512xf32>
    %27 = vector.broadcast %25 : vector<32x1xf32> to vector<32x512xf32>
    %28 = vector.broadcast %26 : vector<1x512xf32> to vector<32x512xf32>
    %29 = arith.mulf %27, %28 : vector<32x512xf32>
    %30 = vector.broadcast %23 : vector<32x1xf32> to vector<32x512xf32>
    %31 = arith.addf %30, %29 : vector<32x512xf32>
    %c1_17 = arith.constant 1 : index
    %c0_18 = arith.constant 0 : index
    %c0_19 = arith.constant 0 : index
    %32 = vector.load %arg6[%c1_17, %c0_18, %c0_19] : memref<3x32x1xf32, #tpu.memory_space<vmem>>, vector<1x32x1xf32>
    %33 = vector.shape_cast %32 : vector<1x32x1xf32> to vector<32x1xf32>
    %34 = vector.extract_strided_slice %19 {offsets = [1, 0], sizes = [1, 512], strides = [1, 1]} : vector<2x512xf32> to vector<1x512xf32>
    %35 = vector.broadcast %33 : vector<32x1xf32> to vector<32x512xf32>
    %36 = vector.broadcast %34 : vector<1x512xf32> to vector<32x512xf32>
    %37 = arith.mulf %35, %36 : vector<32x512xf32>
    %38 = arith.addf %31, %37 : vector<32x512xf32>
    %c2_20 = arith.constant 2 : index
    %c0_21 = arith.constant 0 : index
    %c0_22 = arith.constant 0 : index
    %39 = vector.load %arg6[%c2_20, %c0_21, %c0_22] : memref<3x32x1xf32, #tpu.memory_space<vmem>>, vector<1x32x1xf32>
    %40 = vector.shape_cast %39 : vector<1x32x1xf32> to vector<32x1xf32>
    %41 = vector.broadcast %40 : vector<32x1xf32> to vector<32x512xf32>
    %42 = vector.broadcast %21 : vector<1x512xf32> to vector<32x512xf32>
    %43 = arith.mulf %41, %42 : vector<32x512xf32>
    %44 = arith.addf %38, %43 : vector<32x512xf32>
    %cst = arith.constant 0.000000e+00 : f32
    %45 = vector.broadcast %cst : f32 to vector<32x512xf32>
    %46 = arith.maximumf %44, %45 : vector<32x512xf32>
    %cst_23 = arith.constant dense<0.000000e+00> : vector<2x512xf32>
    %47 = tpu.matmul %1, %46, %cst_23 {dimension_numbers = #tpu.dot_dimension_numbers<[1], [0], [0], [1], [0, 0, 1, 1], [], []>} : vector<2x32xf32>, vector<32x512xf32>, vector<2x512xf32> -> vector<2x512xf32>
    %48 = arith.subf %47, %10 : vector<2x512xf32>
    %49 = arith.mulf %48, %48 : vector<2x512xf32>
    %50 = vector.extract_strided_slice %49 {offsets = [0, 0], sizes = [2, 128], strides = [1, 1]} : vector<2x512xf32> to vector<2x128xf32>
    %51 = vector.extract_strided_slice %49 {offsets = [0, 128], sizes = [2, 128], strides = [1, 1]} : vector<2x512xf32> to vector<2x128xf32>
    %52 = arith.addf %50, %51 : vector<2x128xf32>
    %53 = vector.extract_strided_slice %49 {offsets = [0, 256], sizes = [2, 128], strides = [1, 1]} : vector<2x512xf32> to vector<2x128xf32>
    %54 = arith.addf %52, %53 : vector<2x128xf32>
    %55 = vector.extract_strided_slice %49 {offsets = [0, 384], sizes = [2, 128], strides = [1, 1]} : vector<2x512xf32> to vector<2x128xf32>
    %56 = arith.addf %54, %55 : vector<2x128xf32>
    %cst_24 = arith.constant dense<0.000000e+00> : vector<128xf32>
    %57 = vector.multi_reduction <add>, %56, %cst_24 [0] : vector<2x128xf32> to vector<128xf32>
    %58 = vector.shape_cast %57 : vector<128xf32> to vector<1x128xf32>
    %cst_25 = arith.constant 9.765625E-4 : f32
    %59 = vector.broadcast %cst_25 : f32 to vector<1x128xf32>
    %60 = arith.mulf %58, %59 : vector<1x128xf32>
    %c0_26 = arith.constant 0 : index
    %c0_27 = arith.constant 0 : index
    %c0_28 = arith.constant 0 : index
    %61 = vector.load %arg8[%c0_26, %c0_27, %c0_28] : memref<2x1x128xf32, #tpu.memory_space<vmem>>, vector<1x1x128xf32>
    %62 = vector.shape_cast %61 : vector<1x1x128xf32> to vector<1x128xf32>
    %63 = vector.shape_cast %60 : vector<1x128xf32> to vector<1x1x128xf32>
    tpu.vector_store %arg8[%c0_26, %c0_27, %c0_28], %63 {strides = array<i32>} : memref<2x1x128xf32, #tpu.memory_space<vmem>>, vector<1x1x128xf32>,
    %c1_i32 = arith.constant 1 : i32
    %64 = arith.addi %0, %c1_i32 : i32
    %65 = arith.index_cast %64 : i32 to index
    %c0_29 = arith.constant 0 : index
    %66 = memref.load %arg1[%65, %c0_29] : memref<2x3xf32, #tpu.memory_space<smem>>
    %67 = arith.index_cast %64 : i32 to index
    %c1_30 = arith.constant 1 : index
    %68 = memref.load %arg1[%67, %c1_30] : memref<2x3xf32, #tpu.memory_space<smem>>
    %69 = arith.index_cast %64 : i32 to index
    %c2_31 = arith.constant 2 : index
    %70 = memref.load %arg1[%69, %c2_31] : memref<2x3xf32, #tpu.memory_space<smem>>
    %c1_32 = arith.constant 1 : index
    %c0_33 = arith.constant 0 : index
    %c0_34 = arith.constant 0 : index
    %71 = vector.load %arg3[%c1_32, %c0_33, %c0_34] : memref<2x2x512xf32, #tpu.memory_space<vmem>>, vector<1x2x512xf32>
    %72 = vector.shape_cast %71 : vector<1x2x512xf32> to vector<2x512xf32>
    %c1_35 = arith.constant 1 : index
    %c0_36 = arith.constant 0 : index
    %c0_37 = arith.constant 0 : index
    %73 = vector.load %arg2[%c1_35, %c0_36, %c0_37] : memref<2x2x512xf32, #tpu.memory_space<vmem>>, vector<1x2x512xf32>
    %74 = vector.shape_cast %73 : vector<1x2x512xf32> to vector<2x512xf32>
    %75 = vector.broadcast %66 : f32 to vector<2x512xf32>
    %76 = arith.mulf %74, %75 : vector<2x512xf32>
    %77 = vector.broadcast %68 : f32 to vector<2x512xf32>
    %78 = arith.mulf %72, %77 : vector<2x512xf32>
    %79 = arith.addf %76, %78 : vector<2x512xf32>
    %80 = vector.broadcast %70 : f32 to vector<2x512xf32>
    %81 = arith.addf %79, %80 : vector<2x512xf32>
    %c1_38 = arith.constant 1 : index
    %c0_39 = arith.constant 0 : index
    %c0_40 = arith.constant 0 : index
    %82 = vector.load %arg4[%c1_38, %c0_39, %c0_40] : memref<2x1x512xf32, #tpu.memory_space<vmem>>, vector<1x1x512xf32>
    %83 = vector.shape_cast %82 : vector<1x1x512xf32> to vector<1x512xf32>
    %c1_41 = arith.constant 1 : index
    %c0_42 = arith.constant 0 : index
    %c0_43 = arith.constant 0 : index
    %84 = vector.load %arg5[%c1_41, %c0_42, %c0_43] : memref<2x32x1xf32, #tpu.memory_space<vmem>>, vector<1x32x1xf32>
    %85 = vector.shape_cast %84 : vector<1x32x1xf32> to vector<32x1xf32>
    %c0_44 = arith.constant 0 : index
    %c0_45 = arith.constant 0 : index
    %c0_46 = arith.constant 0 : index
    %86 = vector.load %arg6[%c0_44, %c0_45, %c0_46] : memref<3x32x1xf32, #tpu.memory_space<vmem>>, vector<1x32x1xf32>
    %87 = vector.shape_cast %86 : vector<1x32x1xf32> to vector<32x1xf32>
    %88 = vector.extract_strided_slice %81 {offsets = [0, 0], sizes = [1, 512], strides = [1, 1]} : vector<2x512xf32> to vector<1x512xf32>
    %89 = vector.broadcast %87 : vector<32x1xf32> to vector<32x512xf32>
    %90 = vector.broadcast %88 : vector<1x512xf32> to vector<32x512xf32>
    %91 = arith.mulf %89, %90 : vector<32x512xf32>
    %92 = vector.broadcast %85 : vector<32x1xf32> to vector<32x512xf32>
    %93 = arith.addf %92, %91 : vector<32x512xf32>
    %c1_47 = arith.constant 1 : index
    %c0_48 = arith.constant 0 : index
    %c0_49 = arith.constant 0 : index
    %94 = vector.load %arg6[%c1_47, %c0_48, %c0_49] : memref<3x32x1xf32, #tpu.memory_space<vmem>>, vector<1x32x1xf32>
    %95 = vector.shape_cast %94 : vector<1x32x1xf32> to vector<32x1xf32>
    %96 = vector.extract_strided_slice %81 {offsets = [1, 0], sizes = [1, 512], strides = [1, 1]} : vector<2x512xf32> to vector<1x512xf32>
    %97 = vector.broadcast %95 : vector<32x1xf32> to vector<32x512xf32>
    %98 = vector.broadcast %96 : vector<1x512xf32> to vector<32x512xf32>
    %99 = arith.mulf %97, %98 : vector<32x512xf32>
    %100 = arith.addf %93, %99 : vector<32x512xf32>
    %c2_50 = arith.constant 2 : index
    %c0_51 = arith.constant 0 : index
    %c0_52 = arith.constant 0 : index
    %101 = vector.load %arg6[%c2_50, %c0_51, %c0_52] : memref<3x32x1xf32, #tpu.memory_space<vmem>>, vector<1x32x1xf32>
    %102 = vector.shape_cast %101 : vector<1x32x1xf32> to vector<32x1xf32>
    %103 = vector.broadcast %102 : vector<32x1xf32> to vector<32x512xf32>
    %104 = vector.broadcast %83 : vector<1x512xf32> to vector<32x512xf32>
    %105 = arith.mulf %103, %104 : vector<32x512xf32>
    %106 = arith.addf %100, %105 : vector<32x512xf32>
    %cst_53 = arith.constant 0.000000e+00 : f32
    %107 = vector.broadcast %cst_53 : f32 to vector<32x512xf32>
    %108 = arith.maximumf %106, %107 : vector<32x512xf32>
    %cst_54 = arith.constant dense<0.000000e+00> : vector<2x512xf32>
    %109 = tpu.matmul %1, %108, %cst_54 {dimension_numbers = #tpu.dot_dimension_numbers<[1], [0], [0], [1], [0, 0, 1, 1], [], []>} : vector<2x32xf32>, vector<32x512xf32>, vector<2x512xf32> -> vector<2x512xf32>
    %110 = arith.subf %109, %72 : vector<2x512xf32>
    %111 = arith.mulf %110, %110 : vector<2x512xf32>
    %112 = vector.extract_strided_slice %111 {offsets = [0, 0], sizes = [2, 128], strides = [1, 1]} : vector<2x512xf32> to vector<2x128xf32>
    %113 = vector.extract_strided_slice %111 {offsets = [0, 128], sizes = [2, 128], strides = [1, 1]} : vector<2x512xf32> to vector<2x128xf32>
    %114 = arith.addf %112, %113 : vector<2x128xf32>
    %115 = vector.extract_strided_slice %111 {offsets = [0, 256], sizes = [2, 128], strides = [1, 1]} : vector<2x512xf32> to vector<2x128xf32>
    %116 = arith.addf %114, %115 : vector<2x128xf32>
    %117 = vector.extract_strided_slice %111 {offsets = [0, 384], sizes = [2, 128], strides = [1, 1]} : vector<2x512xf32> to vector<2x128xf32>
    %118 = arith.addf %116, %117 : vector<2x128xf32>
    %cst_55 = arith.constant dense<0.000000e+00> : vector<128xf32>
    %119 = vector.multi_reduction <add>, %118, %cst_55 [0] : vector<2x128xf32> to vector<128xf32>
    %120 = vector.shape_cast %119 : vector<128xf32> to vector<1x128xf32>
    %cst_56 = arith.constant 9.765625E-4 : f32
    %121 = vector.broadcast %cst_56 : f32 to vector<1x128xf32>
    %122 = arith.mulf %120, %121 : vector<1x128xf32>
    %c1_57 = arith.constant 1 : index
    %c0_58 = arith.constant 0 : index
    %c0_59 = arith.constant 0 : index
    %123 = vector.load %arg8[%c1_57, %c0_58, %c0_59] : memref<2x1x128xf32, #tpu.memory_space<vmem>>, vector<1x1x128xf32>
    %124 = vector.shape_cast %123 : vector<1x1x128xf32> to vector<1x128xf32>
    %125 = vector.shape_cast %122 : vector<1x128xf32> to vector<1x1x128xf32>
    tpu.vector_store %arg8[%c1_57, %c0_58, %c0_59], %125 {strides = array<i32>} : memref<2x1x128xf32, #tpu.memory_space<vmem>>, vector<1x1x128xf32>,
    return
  }
  func.func @transform_0(%arg0: i32, %arg1: memref<2x3xf32, #tpu.memory_space<smem>>) -> (i32, i32, i32) {
    %c0_i32 = arith.constant 0 : i32
    %c0_i32_0 = arith.constant 0 : i32
    %c0_i32_1 = arith.constant 0 : i32
    return %arg0, %c0_i32, %c0_i32_0 : i32, i32, i32
  }
  func.func @transform_1(%arg0: i32, %arg1: memref<2x3xf32, #tpu.memory_space<smem>>) -> (i32, i32, i32) {
    %c0_i32 = arith.constant 0 : i32
    %c0_i32_0 = arith.constant 0 : i32
    %c0_i32_1 = arith.constant 0 : i32
    return %arg0, %c0_i32, %c0_i32_0 : i32, i32, i32
  }
  func.func @transform_2(%arg0: i32, %arg1: memref<2x3xf32, #tpu.memory_space<smem>>) -> (i32, i32, i32) {
    %c0_i32 = arith.constant 0 : i32
    %c0_i32_0 = arith.constant 0 : i32
    %c0_i32_1 = arith.constant 0 : i32
    return %arg0, %c0_i32, %c0_i32_0 : i32, i32, i32
  }
  func.func @transform_3(%arg0: i32, %arg1: memref<2x3xf32, #tpu.memory_space<smem>>) -> (i32, i32, i32) {
    %c0_i32 = arith.constant 0 : i32
    %c0_i32_0 = arith.constant 0 : i32
    %c0_i32_1 = arith.constant 0 : i32
    return %arg0, %c0_i32, %c0_i32_0 : i32, i32, i32
  }
  func.func @transform_4(%arg0: i32, %arg1: memref<2x3xf32, #tpu.memory_space<smem>>) -> (i32, i32, i32) {
    %c0_i32 = arith.constant 0 : i32
    %c0_i32_0 = arith.constant 0 : i32
    %c0_i32_1 = arith.constant 0 : i32
    %c0_i32_2 = arith.constant 0 : i32
    return %c0_i32, %c0_i32_0, %c0_i32_1 : i32, i32, i32
  }
  func.func @transform_5(%arg0: i32, %arg1: memref<2x3xf32, #tpu.memory_space<smem>>) -> (i32, i32) {
    %c0_i32 = arith.constant 0 : i32
    %c0_i32_0 = arith.constant 0 : i32
    %c0_i32_1 = arith.constant 0 : i32
    return %c0_i32, %c0_i32_0 : i32, i32
  }
  func.func @transform_6(%arg0: i32, %arg1: memref<2x3xf32, #tpu.memory_space<smem>>) -> (i32, i32, i32) {
    %c0_i32 = arith.constant 0 : i32
    %c0_i32_0 = arith.constant 0 : i32
    %c0_i32_1 = arith.constant 0 : i32
    return %arg0, %c0_i32, %c0_i32_0 : i32, i32, i32
  }
}

</mosaic_0001>

<bundles_post_ra>
// kernel: tpu_custom_call.1
= control target key start
LH: loop header
LB: loop body
LE: loop exit
PB: predicated region body
PF: predicated region fallthrough
CT: control target
= control target key end

     0   :  { %s886_s27 = smov [#allocation3]   ;;  %s1241_s0 = inlined_call_operand.vmem [shape: f32[2,3], index: 0, kind: input, shape index: {}]   ;;  %s1242_s1 = inlined_call_operand.vmem [shape: f32[2,2,512], index: 1, kind: input, shape index: {}]   ;;  %s1243_s2 = inlined_call_operand.vmem [shape: f32[2,2,512], index: 2, kind: input, shape index: {}]   ;;  %s1244_s3 = inlined_call_operand.vmem [shape: f32[2,1,512], index: 3, kind: input, shape index: {}]   ;;  %s1245_s4 = inlined_call_operand.vmem [shape: f32[2,32,1], index: 4, kind: input, shape index: {}]   ;;  %s1246_s5 = inlined_call_operand.vmem [shape: f32[3,32,1], index: 5, kind: input, shape index: {}]   ;;  %s1247_s6 = inlined_call_operand.vmem [shape: f32[2,32], index: 6, kind: input, shape index: {}]   ;;  %s1248_s7 = inlined_call_operand.hbm [shape: f32[2,1,128], index: 7, kind: output, shape index: {}]  }
   0x1   :  { %s13_s26 = sshll.u32 %s1241_s0, 4  ;;  %s14_s26 = int_to_ptr.vmem [resolvable:$true] %s13_s26 }
   0x2   :  { %16 = dma.vmem_to_smem %s14_s26, 32, %s886_s27, [#allocation2] }
   0x3   :  { %882 = dma.done.wait [#allocation2], 32 }
   0x4   :  { %883 = vsyncadd [#allocation2], 4294967264 }
   0x5   :  { %19 = sfence }
   0x6   :  { %v58_v0 = vld [vmem:[%s1246_s5 + $0x18] sm:$0xff]  ;;  %v56_v1 = vld [vmem:[%s1246_s5 + $0x8] sm:$0xff]  ;;  %v887_v3 = vmov 0  }
   0x7   :  { %v54_v2 = vld [vmem:[%s1245_s4 + $0x18] sm:$0xff]  ;;  %845 = vset.pattern.permute.xlu2 %v887_v3  ;;  %844 = vset.pattern.permute.xlu1 %v887_v3 }
   0x8   :  { %843 = vset.pattern.permute.xlu0 %v887_v3  ;;  %66 = vperm.xlu2 %845, %v56_v1  }
   0x9   :  { %76 = vperm.xlu0 %843, %v58_v0   ;;  %125 = vperm.xlu1 %844, %v54_v2  }
   0xa   :  { %20 = vsyncpa [#allocation5], 0  ;;  %v53_v4 = vld [vmem:[%s1245_s4 + $0x10] sm:$0xff]  ;;  %v807_v6 = vld [vmem:[%s1246_s5 + $0x38] sm:$0xff]  ;;  %s36_s21 = sld [smem:[#allocation3]]  ;;  %vm295_vm0 = vcmask 261120  }
   0xb   :  { %v57_v5 = vld [vmem:[%s1246_s5 + $0x10] sm:$0xff]  ;;  %v55_v7 = vld [vmem:[%s1246_s5] sm:$0xff]  ;;  %v811_v9 = vld [vmem:[%s1246_s5 + $0x58] sm:$0xff]  ;;  %s802_s22 = sld [smem:[#allocation3 + $0x1]]  ;;  %vm400_vm1 = vcmask 1041408   ;;  %s790_s14 = sshll.u32 %s1248_s7, 4  ;;  %s791_s14 = int_to_ptr.hbm [resolvable:$true] %s790_s14 }
   0xc   :  { %v806_v8 = vld [vmem:[%s1246_s5 + $0x30] sm:$0xff]  ;;  %v805_v11 = vld [vmem:[%s1246_s5 + $0x28] sm:$0xff]  ;;  %v804_v14 = vld [vmem:[%s1246_s5 + $0x20] sm:$0xff]  ;;  %s803_s23 = sld [smem:[#allocation3 + $0x2]]  ;;  %s889_s15 = smov 16  }
   0xd   :  { %v810_v10 = vld [vmem:[%s1246_s5 + $0x50] sm:$0xff]  ;;  %v52_v12 = vld [vmem:[%s1245_s4 + $0x8] sm:$0xff]  ;;  %v51_v15 = vld [vmem:[%s1245_s4] sm:$0xff]  ;;  %s1008_s26 = sld [smem:[#allocation3 + $0x81]]  ;;  %s890_s16 = smov 1  }
   0xe   :  { %v809_v13 = vld [vmem:[%s1246_s5 + $0x48] sm:$0xff]  ;;  %v808_v16 = vld [vmem:[%s1246_s5 + $0x40] sm:$0xff]  ;;  %v825_v17 = vld [vmem:[%s1245_s4 + $0x38] sm:$0xff] }
   0xf   :  { %v824_v18 = vld [vmem:[%s1245_s4 + $0x30] sm:$0xff]  ;;  %v41_v19 = vld [vmem:[%s1243_s2] sm:$0xff]  ;;  %v823_v20 = vld [vmem:[%s1245_s4 + $0x28] sm:$0xff] }
  0x10   :  { %120 = vperm.xlu2 %845, %v53_v4   ;;  %380 = vst [vmem:[#allocation1] ss:$4 sm:$0xff] %v41_v19  ;;  %v822_v21 = vld [vmem:[%s1245_s4 + $0x20] sm:$0xff]  ;;  %v43_v24 = vstv %s36_s21  ;;  %s1004_s4 = sld [smem:[#allocation3 + $0x80]]  ;;  %v1013_v43 = vld [vmem:[%s1243_s2 + $0x8] sm:$0xff] }
  0x11   :  { %71 = vperm.xlu0 %843, %v57_v5   ;;  %166 = vperm.xlu1 %844, %v807_v6   ;;  %v42_v23 = vld [vmem:[%s1242_s1] sm:$0xff]  ;;  %v45_v25 = vstv %s802_s22  ;;  %v820_v44 = vld [vmem:[%s1242_s1 + $0x8] sm:$0xff]  ;;  %s1076_s1 = sld [smem:[#allocation3 + $0x82]] }
  0x12   :  { %v44_v27 = vmul.f32 %v43_v24, %v42_v23  ;;  %v46_v28 = vmul.f32 %v45_v25, %v41_v19  ;;  %v48_v30 = vstv %s803_s23  ;;  %v50_v51 = vld [vmem:[%s1244_s3] sm:$0xf] }
  0x13   :  { %v423_v46 = vstv %s1008_s26  ;;  %v1048_v63 = vperm.slane %v50_v51, 0  ;;  %v1054_v2 = vperm.slane %v50_v51, 3 }
  0x14   :  { %v47_v29 = vadd.f32 %v46_v28, %v44_v27  ;;  %v424_v62 = vmul.f32 %v1013_v43, %v423_v46 }
  0x16   :  { %v49_v32 = vadd.f32 %v48_v30, %v47_v29  ;;  %v421_v45 = vstv %s1004_s4 }
  0x17   :  { %v422_v61 = vmul.f32 %v820_v44, %v421_v45 }
  0x18   :  { %61 = vperm.xlu2 %845, %v55_v7   ;;  %v80_v35 = vperm.slane %v49_v32, 0  ;;  %v81_v36 = vperm.slane %v49_v32, 2  ;;  %v82_v37 = vperm.slane %v49_v32, 4  ;;  %v83_v38 = vperm.slane %v49_v32, 6 }
  0x19   :  { %161 = vperm.xlu0 %843, %v806_v8   ;;  %235 = vperm.xlu1 %844, %v811_v9   ;;  %v169_v39 = vperm.slane %v49_v32, 1  ;;  %v170_v40 = vperm.slane %v49_v32, 3  ;;  %v171_v41 = vperm.slane %v49_v32, 5  ;;  %v172_v42 = vperm.slane %v49_v32, 7 }
  0x1a   :  { %v1020_v47 = vperm.slane %v80_v35, 0  ;;  %v1022_v48 = vperm.slane %v81_v36, 0  ;;  %v1024_v49 = vperm.slane %v82_v37, 0  ;;  %v1026_v50 = vperm.slane %v83_v38, 0 }
  0x1b   :  { %v1031_v53 = vperm.slane %v169_v39, 1  ;;  %v1033_v54 = vperm.slane %v170_v40, 1  ;;  %v1035_v55 = vperm.slane %v171_v41, 1  ;;  %v1037_v56 = vperm.slane %v172_v42, 1 }
  0x20   :  { %230 = vperm.xlu2 %845, %v810_v10  }
  0x21   :  { %156 = vperm.xlu1 %844, %v805_v11   ;;  %115 = vperm.xlu0 %843, %v52_v12  }
  0x28   :  { %225 = vperm.xlu2 %845, %v809_v13  }
  0x29   :  { %151 = vperm.xlu1 %844, %v804_v14   ;;  %110 = vperm.xlu0 %843, %v51_v15  }
  0x30   :  { %451 = vperm.xlu2 %845, %v57_v5  }
  0x31   :  { %220 = vperm.xlu1 %844, %v808_v16   ;;  %456 = vperm.xlu0 %843, %v58_v0   ;;  %v1050_v0 = vperm.slane %v50_v51, 1 }
  0x38   :  { %446 = vperm.xlu2 %845, %v56_v1   ;;  %v1052_v1 = vperm.slane %v50_v51, 2 }
  0x39   :  { %545 = vperm.xlu1 %844, %v807_v6   ;;  %505 = vperm.xlu0 %843, %v825_v17  }
  0x40   :  { %613 = vperm.xlu2 %845, %v811_v9  }
  0x41   :  { %540 = vperm.xlu1 %844, %v806_v8   ;;  %500 = vperm.xlu0 %843, %v824_v18  }
  0x48   :  { %535 = vperm.xlu2 %845, %v805_v11  }
  0x49   :  { %495 = vperm.xlu1 %844, %v823_v20   ;;  %441 = vperm.xlu0 %843, %v55_v7  }
  0x50   :  { %530 = vperm.xlu2 %845, %v804_v14  }
  0x51   :  { %490 = vperm.xlu1 %844, %v822_v21   ;;  %608 = vperm.xlu0 %843, %v810_v10  }
  0x59   :  { %598 = vperm.xlu1 %844, %v808_v16   ;;  %603 = vperm.xlu0 %843, %v809_v13  }
  0x62   :  { %v997_v22 = vpop.permute.xlu2 %66 }
  0x63   :  { %v1041_v57 = vmul.f32 %v1020_v47, %v997_v22  ;;  %v1045_v58 = vmul.f32 %v1022_v48, %v997_v22 }
  0x6a   :  { %v1002_v26 = vpop.permute.xlu2 %120 }
  0x72   :  { %v1006_v31 = vpop.permute.xlu2 %61 }
  0x7a   :  { %v231_v52 = vpop.permute.xlu2 %230 }
  0x7b   :  { %v77_v33 = vpop.permute.xlu0 %76  ;;  %v126_v34 = vpop.permute.xlu1 %125  ;;  %v255_v15 = vmul.f32 %v1048_v63, %v231_v52  ;;  %v256_v16 = vmul.f32 %v1050_v0, %v231_v52  ;;  %v257_v17 = vmul.f32 %v1052_v1, %v231_v52  ;;  %v258_v18 = vmul.f32 %v1054_v2, %v231_v52 }
  0x7c   :  { %v104_v3 = vmul.f32 %v1020_v47, %v77_v33  ;;  %v105_v4 = vmul.f32 %v1022_v48, %v77_v33  ;;  %v106_v5 = vmul.f32 %v1024_v49, %v77_v33  ;;  %v107_v6 = vmul.f32 %v1026_v50, %v77_v33 }
  0x7e   :  { %v140_v19 = vadd.f32 %v126_v34, %v104_v3  ;;  %v141_v20 = vadd.f32 %v126_v34, %v105_v4  ;;  %v142_v21 = vadd.f32 %v126_v34, %v106_v5  ;;  %v143_v23 = vadd.f32 %v126_v34, %v107_v6 }
  0x82   :  { %v226_v37 = vpop.permute.xlu2 %225 }
  0x83   :  { %v72_v59 = vpop.permute.xlu0 %71  ;;  %v167_v60 = vpop.permute.xlu1 %166 }
  0x84   :  { %v100_v7 = vmul.f32 %v1020_v47, %v72_v59  ;;  %v101_v8 = vmul.f32 %v1022_v48, %v72_v59  ;;  %v102_v9 = vmul.f32 %v1024_v49, %v72_v59  ;;  %v103_v10 = vmul.f32 %v1026_v50, %v72_v59 }
  0x85   :  { %v193_v11 = vmul.f32 %v1031_v53, %v167_v60  ;;  %v194_v12 = vmul.f32 %v1033_v54, %v167_v60  ;;  %v195_v13 = vmul.f32 %v1035_v55, %v167_v60  ;;  %v196_v14 = vmul.f32 %v1037_v56, %v167_v60 }
  0x86   :  { %v136_v24 = vadd.f32 %v1002_v26, %v100_v7  ;;  %v137_v25 = vadd.f32 %v1002_v26, %v101_v8  ;;  %v138_v27 = vadd.f32 %v1002_v26, %v102_v9  ;;  %v139_v28 = vadd.f32 %v1002_v26, %v103_v10 }
  0x87   :  { %v209_v32 = vadd.f32 %v193_v11, %v140_v19  ;;  %v210_v33 = vadd.f32 %v194_v12, %v141_v20  ;;  %v211_v35 = vadd.f32 %v195_v13, %v142_v21  ;;  %v212_v36 = vadd.f32 %v196_v14, %v143_v23 }
  0x88   :  { %v425_v13 = vadd.f32 %v424_v62, %v422_v61  ;;  %v98_v21 = vmul.f32 %v1024_v49, %v997_v22  ;;  %v99_v23 = vmul.f32 %v1026_v50, %v997_v22 }
  0x8b   :  { %v162_v29 = vpop.permute.xlu0 %161  ;;  %v236_v30 = vpop.permute.xlu1 %235 }
  0x8c   :  { %v189_v38 = vmul.f32 %v1031_v53, %v162_v29  ;;  %v190_v34 = vmul.f32 %v1033_v54, %v162_v29  ;;  %v191_v39 = vmul.f32 %v1035_v55, %v162_v29  ;;  %v192_v40 = vmul.f32 %v1037_v56, %v162_v29  ;;  %v1099_v29 = vpop.permute.xlu2 %451 }
  0x8d   :  { %v259_v41 = vmul.f32 %v1048_v63, %v236_v30  ;;  %v260_v26 = vmul.f32 %v1050_v0, %v236_v30  ;;  %v261_v42 = vmul.f32 %v1052_v1, %v236_v30  ;;  %v262_v44 = vmul.f32 %v1054_v2, %v236_v30 }
  0x8e   :  { %v205_v45 = vadd.f32 %v189_v38, %v136_v24  ;;  %v206_v46 = vadd.f32 %v190_v34, %v137_v25  ;;  %v207_v51 = vadd.f32 %v191_v39, %v138_v27  ;;  %v208_v52 = vadd.f32 %v192_v40, %v139_v28 }
  0x8f   :  { %v275_v59 = vadd.f32 %v259_v41, %v209_v32  ;;  %v276_v60 = vadd.f32 %v260_v26, %v210_v33  ;;  %v277_v3 = vadd.f32 %v261_v42, %v211_v35  ;;  %v278_v4 = vadd.f32 %v262_v44, %v212_v36 }
  0x90   :  { %v271_v5 = vadd.f32 %v255_v15, %v205_v45  ;;  %v272_v6 = vadd.f32 %v256_v16, %v206_v46  ;;  %v273_v7 = vadd.f32 %v257_v17, %v207_v51  ;;  %v274_v8 = vadd.f32 %v258_v18, %v208_v52 }
  0x91   :  { %v291_v9 = vmax.f32 %v275_v59, 0.0  ;;  %v292_v10 = vmax.f32 %v276_v60, 0.0  ;;  %v293_v11 = vmax.f32 %v277_v3, 0.0  ;;  %v294_v12 = vmax.f32 %v278_v4, 0.0 }
  0x92   :  { %v287_v14 = vmax.f32 %v271_v5, 0.0  ;;  %v288_v19 = vmax.f32 %v272_v6, 0.0  ;;  %v289_v20 = vmax.f32 %v273_v7, 0.0  ;;  %v426_v24 = vstv %s1076_s1 }
  0x93   :  { %311 = vmatpush.msra.mxu0 %v291_v9  ;;  %331 = vmatpush.msra.mxu1 %v292_v10  ;;  %v157_v15 = vpop.permute.xlu1 %156  ;;  %v116_v16 = vpop.permute.xlu0 %115  ;;  %v290_v17 = vmax.f32 %v274_v8, 0.0  ;;  %v1097_v28 = vadd.f32 %v426_v24, %v425_v13  ;;  %v251_v35 = vmul.f32 %v1048_v63, %v226_v37  ;;  %v252_v38 = vmul.f32 %v1050_v0, %v226_v37 }
  0x94   :  { %351 = vmatpush.msra.mxu2 %v293_v11  ;;  %371 = vmatpush.msra.mxu3 %v294_v12  ;;  %v185_v18 = vmul.f32 %v1031_v53, %v157_v15  ;;  %v186_v61 = vmul.f32 %v1033_v54, %v157_v15  ;;  %v187_v62 = vmul.f32 %v1035_v55, %v157_v15  ;;  %v1120_v11 = vpop.permute.xlu2 %446 }
  0x95   :  { %v188_v25 = vmul.f32 %v1037_v56, %v157_v15  ;;  %v132_v27 = vadd.f32 %v116_v16, %v1041_v57  ;;  %v133_v22 = vadd.f32 %v116_v16, %v1045_v58  ;;  %312 = vmatpush.msra.mxu0 %v287_v14  ;;  %v134_v30 = vadd.f32 %v116_v16, %v98_v21 }
  0x96   :  { %v135_v32 = vadd.f32 %v116_v16, %v99_v23  ;;  %332 = vmatpush.msra.mxu1 %v288_v19  ;;  %352 = vmatpush.msra.mxu2 %v289_v20  ;;  %v253_v57 = vmul.f32 %v1052_v1, %v226_v37  ;;  %v254_v39 = vmul.f32 %v1054_v2, %v226_v37  ;;  %v460_v52 = vperm.slane %v1097_v28, 0 }
  0x97   :  { %372 = vmatpush.msra.mxu3 %v290_v17  ;;  %v201_v33 = vadd.f32 %v185_v18, %v132_v27  ;;  %v202_v36 = vadd.f32 %v186_v61, %v133_v22  ;;  %v203_v34 = vadd.f32 %v187_v62, %v134_v30  ;;  %v461_v59 = vperm.slane %v1097_v28, 2  ;;  %v821_v18 = vld [vmem:[%s1244_s3 + $0x4] sm:$0xf] }
  0x98   :  { %v204_v58 = vadd.f32 %v188_v25, %v135_v32  ;;  %v92_v60 = vmul.f32 %v1020_v47, %v1006_v31  ;;  %v93_v3 = vmul.f32 %v1022_v48, %v1006_v31  ;;  %v94_v37 = vmul.f32 %v1024_v49, %v1006_v31 }
  0x99   :  { %v267_v40 = vadd.f32 %v251_v35, %v201_v33  ;;  %v268_v41 = vadd.f32 %v252_v38, %v202_v36  ;;  %v269_v26 = vadd.f32 %v253_v57, %v203_v34  ;;  %v462_v4 = vperm.slane %v1097_v28, 4 }
  0x9a   :  { %v270_v42 = vadd.f32 %v254_v39, %v204_v58  ;;  %v95_v5 = vmul.f32 %v1026_v50, %v1006_v31  ;;  %v463_v31 = vperm.slane %v1097_v28, 6  ;;  %v1123_v50 = vperm.slane %v460_v52, 0 }
  0x9b   :  { %v152_v44 = vpop.permute.xlu1 %151  ;;  %v111_v45 = vpop.permute.xlu0 %110  ;;  %v283_v46 = vmax.f32 %v267_v40, 0.0  ;;  %v284_v51 = vmax.f32 %v268_v41, 0.0  ;;  %v285_v7 = vmax.f32 %v269_v26, 0.0  ;;  %v1127_v14 = vperm.slane %v462_v4, 0  ;;  %v1158_v40 = vld [vmem:[%s1247_s6] sm:$0x3] }
  0x9c   :  { %v181_v6 = vmul.f32 %v1031_v53, %v152_v44  ;;  %v286_v8 = vmax.f32 %v270_v42, 0.0  ;;  %v182_v9 = vmul.f32 %v1033_v54, %v152_v44  ;;  %v183_v47 = vmul.f32 %v1035_v55, %v152_v44  ;;  %v614_v57 = vpop.permute.xlu2 %613  ;;  %s888_s6 = smov [#allocation4]  }
  0x9d   :  { %313 = vmatpush.msra.mxu0 %v283_v46  ;;  %333 = vmatpush.msra.mxu1 %v284_v51  ;;  %v184_v48 = vmul.f32 %v1037_v56, %v152_v44  ;;  %v128_v10 = vadd.f32 %v111_v45, %v92_v60  ;;  %v129_v49 = vadd.f32 %v111_v45, %v93_v3  ;;  %v1125_v53 = vperm.slane %v461_v59, 0  ;;  %s788_s11 = sshll.u32 %s888_s6, 4  ;;  %s789_s11 = int_to_ptr.vmem [resolvable:$true] %s788_s11 }
  0x9e   :  { %v130_v12 = vadd.f32 %v111_v45, %v94_v37  ;;  %v131_v13 = vadd.f32 %v111_v45, %v95_v5  ;;  %353 = vmatpush.msra.mxu2 %v285_v7  ;;  %373 = vmatpush.msra.mxu3 %v286_v8  ;;  %v548_v55 = vperm.slane %v1097_v28, 1  ;;  %v1137_v61 = vperm.slane %v463_v31, 0 }
  0x9f   :  { %v197_v19 = vadd.f32 %v181_v6, %v128_v10  ;;  %v198_v20 = vadd.f32 %v182_v9, %v129_v49  ;;  %v549_v62 = vperm.slane %v1097_v28, 3  ;;  %v550_v25 = vperm.slane %v1097_v28, 5 }
  0xa0   :  { %v199_v21 = vadd.f32 %v183_v47, %v130_v12  ;;  %v200_v23 = vadd.f32 %v184_v48, %v131_v13  ;;  %v551_v27 = vperm.slane %v1097_v28, 7  ;;  %v1142_v32 = vperm.slane %v548_v55, 1 }
  0xa1   :  { %v1148_v33 = vperm.slane %v821_v18, 2  ;;  %v1150_v58 = vperm.slane %v549_v62, 1  ;;  %v1152_v28 = vperm.slane %v550_v25, 1  ;;  %v1168_v60 = vperm.slane %v821_v18, 3 }
  0xa2   :  { %v1160_v41 = vperm.slane %v551_v27, 1  ;;  %v481_v62 = vmul.f32 %v1125_v53, %v1099_v29  ;;  %v482_v25 = vmul.f32 %v1127_v14, %v1099_v29  ;;  %v483_v27 = vmul.f32 %v1137_v61, %v1099_v29 }
  0xa3   :  { %v221_v54 = vpop.permute.xlu1 %220  ;;  %v457_v56 = vpop.permute.xlu0 %456  ;;  %v639_v10 = vmul.f32 %v1148_v33, %v614_v57  ;;  %v640_v12 = vmul.f32 %v1168_v60, %v614_v57 }
  0xa4   :  { %v247_v24 = vmul.f32 %v1048_v63, %v221_v54  ;;  %v248_v15 = vmul.f32 %v1050_v0, %v221_v54  ;;  %v249_v16 = vmul.f32 %v1052_v1, %v221_v54  ;;  %v250_v17 = vmul.f32 %v1054_v2, %v221_v54 }
  0xa5   :  { %v1144_v1 = vperm.slane %v821_v18, 0  ;;  %v1146_v2 = vperm.slane %v821_v18, 1  ;;  %v484_v39 = vmul.f32 %v1123_v50, %v457_v56  ;;  %v485_v26 = vmul.f32 %v1125_v53, %v457_v56 }
  0xa6   :  { %v263_v22 = vadd.f32 %v247_v24, %v197_v19  ;;  %v264_v63 = vadd.f32 %v248_v15, %v198_v20  ;;  %v265_v30 = vadd.f32 %v249_v16, %v199_v21  ;;  %v266_v0 = vadd.f32 %v250_v17, %v200_v23  ;;  %v536_v23 = vpop.permute.xlu2 %535 }
  0xa7   :  { %v486_v42 = vmul.f32 %v1127_v14, %v457_v56  ;;  %v487_v44 = vmul.f32 %v1137_v61, %v457_v56  ;;  %v637_v8 = vmul.f32 %v1144_v1, %v614_v57  ;;  %v638_v47 = vmul.f32 %v1146_v2, %v614_v57 }
  0xa8   :  { %v279_v35 = vmax.f32 %v263_v22, 0.0  ;;  %v280_v36 = vmax.f32 %v264_v63, 0.0  ;;  %v281_v38 = vmax.f32 %v265_v30, 0.0  ;;  %v282_v34 = vmax.f32 %v266_v0, 0.0 }
  0xa9   :  { %v480_v18 = vmul.f32 %v1123_v50, %v1099_v29  ;;  %v478_v29 = vmul.f32 %v1127_v14, %v1120_v11 }
  0xaa   :  { %314 = vmatpush.msra.mxu0 %v279_v35  ;;  %334 = vmatpush.msra.mxu1 %v280_v36 }
  0xab   :  { %v546_v45 = vpop.permute.xlu1 %545  ;;  %v506_v46 = vpop.permute.xlu0 %505  ;;  %354 = vmatpush.msra.mxu2 %v281_v38  ;;  %374 = vmatpush.msra.mxu3 %v282_v34 }
  0xac   :  { %v572_v51 = vmul.f32 %v1142_v32, %v546_v45  ;;  %v573_v52 = vmul.f32 %v1150_v58, %v546_v45  ;;  %v574_v59 = vmul.f32 %v1152_v28, %v546_v45  ;;  %v575_v3 = vmul.f32 %v1160_v41, %v546_v45  ;;  %814 = vmatmul.msk.f32.vlgmr.msra.gmra.mxu2 %vm295_vm0, %v1158_v40 }
  0xad   :  { %v520_v37 = vadd.f32 %v506_v46, %v484_v39  ;;  %v521_v4 = vadd.f32 %v506_v46, %v485_v26  ;;  %v522_v5 = vadd.f32 %v506_v46, %v486_v42  ;;  %v523_v6 = vadd.f32 %v506_v46, %v487_v44  ;;  %815 = vmatmul.msk.f32.vlgmr.msra.gmra.mxu3 %vm295_vm0, %v1158_v40 }
  0xae   :  { %812 = vmatmul.msk.f32.vlgmr.msra.gmra.mxu0 %vm295_vm0, %v1158_v40  ;;  %813 = vmatmul.msk.f32.vlgmr.msra.gmra.mxu1 %vm295_vm0, %v1158_v40  ;;  %v531_v35 = vpop.permute.xlu2 %530  ;;  %v476_v39 = vmul.f32 %v1123_v50, %v1120_v11  ;;  %v477_v26 = vmul.f32 %v1125_v53, %v1120_v11  ;;  %v479_v42 = vmul.f32 %v1137_v61, %v1120_v11 }
  0xaf   :  { %v588_v7 = vadd.f32 %v572_v51, %v520_v37  ;;  %v589_v9 = vadd.f32 %v573_v52, %v521_v4  ;;  %v590_v48 = vadd.f32 %v574_v59, %v522_v5  ;;  %v591_v49 = vadd.f32 %v575_v3, %v523_v6 }
  0xb0   :  { %v564_v44 = vmul.f32 %v1142_v32, %v536_v23  ;;  %v565_v45 = vmul.f32 %v1150_v58, %v536_v23  ;;  %v566_v46 = vmul.f32 %v1152_v28, %v536_v23  ;;  %v567_v51 = vmul.f32 %v1160_v41, %v536_v23 }
  0xb1   :  { %v653_v13 = vadd.f32 %v637_v8, %v588_v7  ;;  %v654_v31 = vadd.f32 %v638_v47, %v589_v9  ;;  %v655_v54 = vadd.f32 %v639_v10, %v590_v48  ;;  %v656_v55 = vadd.f32 %v640_v12, %v591_v49 }
  0xb2   :  { %v560_v52 = vmul.f32 %v1142_v32, %v531_v35  ;;  %v561_v59 = vmul.f32 %v1150_v58, %v531_v35  ;;  %v562_v3 = vmul.f32 %v1152_v28, %v531_v35 }
  0xb3   :  { %v541_v56 = vpop.permute.xlu1 %540  ;;  %v501_v19 = vpop.permute.xlu0 %500  ;;  %v669_v20 = vmax.f32 %v653_v13, 0.0  ;;  %v670_v21 = vmax.f32 %v654_v31, 0.0  ;;  %v671_v24 = vmax.f32 %v655_v54, 0.0  ;;  %v672_v15 = vmax.f32 %v656_v55, 0.0 }
  0xb4   :  { %v568_v22 = vmul.f32 %v1142_v32, %v541_v56  ;;  %v569_v63 = vmul.f32 %v1150_v58, %v541_v56  ;;  %v570_v30 = vmul.f32 %v1152_v28, %v541_v56  ;;  %v571_v0 = vmul.f32 %v1160_v41, %v541_v56 }
  0xb5   :  { %685 = vmatpush.msrb.mxu0 %v669_v20  ;;  %705 = vmatpush.msrb.mxu1 %v670_v21  ;;  %v516_v36 = vadd.f32 %v501_v19, %v480_v18  ;;  %v517_v38 = vadd.f32 %v501_v19, %v481_v62  ;;  %v518_v34 = vadd.f32 %v501_v19, %v482_v25 }
  0xb6   :  { %725 = vmatpush.msrb.mxu2 %v671_v24  ;;  %745 = vmatpush.msrb.mxu3 %v672_v15  ;;  %v519_v57 = vadd.f32 %v501_v19, %v483_v27 }
  0xb7   :  { %v584_v5 = vadd.f32 %v568_v22, %v516_v36  ;;  %v585_v6 = vadd.f32 %v569_v63, %v517_v38  ;;  %v586_v7 = vadd.f32 %v570_v30, %v518_v34 }
  0xb8   :  { %v587_v11 = vadd.f32 %v571_v0, %v519_v57 }
  0xbb   :  { %v496_v16 = vpop.permute.xlu1 %495  ;;  %v442_v17 = vpop.permute.xlu0 %441 }
  0xbc   :  { %v512_v8 = vadd.f32 %v496_v16, %v476_v39  ;;  %v513_v9 = vadd.f32 %v496_v16, %v477_v26  ;;  %v472_v47 = vmul.f32 %v1123_v50, %v442_v17  ;;  %v473_v48 = vmul.f32 %v1125_v53, %v442_v17 }
  0xbd   :  { %v514_v49 = vadd.f32 %v496_v16, %v478_v29  ;;  %v515_v12 = vadd.f32 %v496_v16, %v479_v42  ;;  %v563_v50 = vmul.f32 %v1160_v41, %v531_v35  ;;  %v474_v53 = vmul.f32 %v1127_v14, %v442_v17 }
  0xbe   :  { %v475_v20 = vmul.f32 %v1137_v61, %v442_v17  ;;  %v580_v21 = vadd.f32 %v564_v44, %v512_v8  ;;  %v581_v16 = vadd.f32 %v565_v45, %v513_v9  ;;  %v384_v8 = vld.sshfl [vmem:[#allocation1 + $0x18] sm:$0xff pattern:$0x73625140] }
  0xbf   :  { %v582_v27 = vadd.f32 %v566_v46, %v514_v49  ;;  %v583_v30 = vadd.f32 %v567_v51, %v515_v12 }
  0xc3   :  { %v491_v37 = vpop.permute.xlu1 %490  ;;  %v609_v4 = vpop.permute.xlu0 %608 }
  0xc4   :  { %v633_v10 = vmul.f32 %v1144_v1, %v609_v4  ;;  %v634_v32 = vmul.f32 %v1146_v2, %v609_v4  ;;  %v635_v58 = vmul.f32 %v1148_v33, %v609_v4  ;;  %v636_v28 = vmul.f32 %v1168_v60, %v609_v4 }
  0xc5   :  { %v508_v13 = vadd.f32 %v491_v37, %v472_v47  ;;  %v509_v31 = vadd.f32 %v491_v37, %v473_v48  ;;  %v510_v62 = vadd.f32 %v491_v37, %v474_v53  ;;  %v511_v25 = vadd.f32 %v491_v37, %v475_v20 }
  0xc6   :  { %v649_v54 = vadd.f32 %v633_v10, %v584_v5  ;;  %v650_v55 = vadd.f32 %v634_v32, %v585_v6  ;;  %v651_v56 = vadd.f32 %v635_v58, %v586_v7  ;;  %v652_v19 = vadd.f32 %v636_v28, %v587_v11  ;;  %v381_v6 = vld.sshfl [vmem:[#allocation1] sm:$0xff pattern:$0x73625140]  ;;  %v382_v7 = vld.sshfl [vmem:[#allocation1 + $0x8] sm:$0xff pattern:$0x73625140] }
  0xc7   :  { %v576_v0 = vadd.f32 %v560_v52, %v508_v13  ;;  %v577_v41 = vadd.f32 %v561_v59, %v509_v31  ;;  %v578_v26 = vadd.f32 %v562_v3, %v510_v62  ;;  %v579_v29 = vadd.f32 %v563_v50, %v511_v25  ;;  %v383_v11 = vld.sshfl [vmem:[#allocation1 + $0x10] sm:$0xff pattern:$0x73625140] }
  0xc8   :  { %v665_v23 = vmax.f32 %v649_v54, 0.0  ;;  %v666_v24 = vmax.f32 %v650_v55, 0.0  ;;  %v667_v15 = vmax.f32 %v651_v56, 0.0  ;;  %v668_v18 = vmax.f32 %v652_v19, 0.0  ;;  %754 = vst [vmem:[#allocation1] ss:$4 sm:$0xff] %v1013_v43 }
  0xca   :  { %686 = vmatpush.msrb.mxu0 %v665_v23  ;;  %706 = vmatpush.msrb.mxu1 %v666_v24 }
  0xcb   :  { %v599_v22 = vpop.permute.xlu1 %598  ;;  %v604_v63 = vpop.permute.xlu0 %603  ;;  %726 = vmatpush.msrb.mxu2 %v667_v15  ;;  %746 = vmatpush.msrb.mxu3 %v668_v18 }
  0xcc   :  { %v625_v14 = vmul.f32 %v1144_v1, %v599_v22  ;;  %v626_v61 = vmul.f32 %v1146_v2, %v599_v22  ;;  %v627_v17 = vmul.f32 %v1148_v33, %v599_v22  ;;  %v628_v35 = vmul.f32 %v1168_v60, %v599_v22 }
  0xcd   :  { %v629_v36 = vmul.f32 %v1144_v1, %v604_v63  ;;  %v630_v38 = vmul.f32 %v1146_v2, %v604_v63  ;;  %v631_v34 = vmul.f32 %v1148_v33, %v604_v63  ;;  %v632_v57 = vmul.f32 %v1168_v60, %v604_v63 }
  0xce   :  { %v641_v39 = vadd.f32 %v625_v14, %v576_v0  ;;  %v642_v46 = vadd.f32 %v626_v61, %v577_v41  ;;  %v643_v52 = vadd.f32 %v627_v17, %v578_v26  ;;  %v644_v59 = vadd.f32 %v628_v35, %v579_v29 }
  0xcf   :  { %v645_v42 = vadd.f32 %v629_v36, %v580_v21  ;;  %v646_v44 = vadd.f32 %v630_v38, %v581_v16  ;;  %v647_v45 = vadd.f32 %v631_v34, %v582_v27  ;;  %v648_v51 = vadd.f32 %v632_v57, %v583_v30  ;;  %v755_v15 = vld.sshfl [vmem:[#allocation1] sm:$0xff pattern:$0x73625140]  ;;  %v756_v18 = vld.sshfl [vmem:[#allocation1 + $0x8] sm:$0xff pattern:$0x73625140] }
  0xd0   :  { %v657_v2 = vmax.f32 %v641_v39, 0.0  ;;  %v658_v33 = vmax.f32 %v642_v46, 0.0  ;;  %v659_v60 = vmax.f32 %v643_v52, 0.0  ;;  %v660_v3 = vmax.f32 %v644_v59, 0.0 }
  0xd1   :  { %v661_v37 = vmax.f32 %v645_v42, 0.0  ;;  %v662_v4 = vmax.f32 %v646_v44, 0.0  ;;  %v663_v5 = vmax.f32 %v647_v45, 0.0  ;;  %v664_v1 = vmax.f32 %v648_v51, 0.0 }
  0xd2   :  { %v757_v30 = vld.sshfl [vmem:[#allocation1 + $0x10] sm:$0xff pattern:$0x73625140]  ;;  %v758_v0 = vld.sshfl [vmem:[#allocation1 + $0x18] sm:$0xff pattern:$0x73625140] }
  0xd3   :  { %687 = vmatpush.msrb.mxu0 %v661_v37  ;;  %707 = vmatpush.msrb.mxu1 %v662_v4 }
  0xd4   :  { %727 = vmatpush.msrb.mxu2 %v663_v5  ;;  %747 = vmatpush.msrb.mxu3 %v664_v1 }
  0xd5   :  { %688 = vmatpush.msrb.mxu0 %v657_v2  ;;  %708 = vmatpush.msrb.mxu1 %v658_v33 }
  0xd6   :  { %728 = vmatpush.msrb.mxu2 %v659_v60  ;;  %748 = vmatpush.msrb.mxu3 %v660_v3 }
  0xd7   :  { %836 = vmatmul.msk.f32.vlgmr.msrb.gmra.mxu2 %vm295_vm0, %v1158_v40  ;;  %837 = vmatmul.msk.f32.vlgmr.msrb.gmra.mxu3 %vm295_vm0, %v1158_v40 }
  0xd8   :  { %834 = vmatmul.msk.f32.vlgmr.msrb.gmra.mxu0 %vm295_vm0, %v1158_v40  ;;  %835 = vmatmul.msk.f32.vlgmr.msrb.gmra.mxu1 %vm295_vm0, %v1158_v40 }
 0x12b   :  { %v316_v9 = vpop.f32.mrf.mxu0  ;;  %v336_v48 = vpop.f32.mrf.mxu1 }
 0x12c   :  { %v389_v47 = vsub.f32 %v316_v9, %v381_v6  ;;  %v390_v10 = vsub.f32 %v336_v48, %v382_v7 }
 0x12e   :  { %v393_v32 = vmul.f32 %v389_v47, %v389_v47  ;;  %v394_v58 = vmul.f32 %v390_v10, %v390_v10 }
 0x12f   :  { %v356_v28 = vpop.f32.mrf.mxu2 }
 0x130   :  { %v397_v49 = vadd.f32 %v394_v58, %v393_v32  ;;  %v391_v12 = vsub.f32 %v356_v28, %v383_v11  ;;  %v376_v13 = vpop.f32.mrf.mxu3 }
 0x131   :  { %v392_v31 = vsub.f32 %v376_v13, %v384_v8 }
 0x132   :  { %v395_v54 = vmul.f32 %v391_v12, %v391_v12 }
 0x133   :  { %v396_v55 = vmul.f32 %v392_v31, %v392_v31 }
 0x134   :  { %v398_v40 = vadd.f32 %v397_v49, %v395_v54 }
 0x136   :  { %v399_v56 = vadd.f32 %v398_v40, %v396_v55 }
 0x138   :  { %v401_v19 = vsel %vm400_vm1, %v399_v56, 0.0 }
 0x139   :  { %v402_v50 = vrot.slane %v401_v19, 4 }
 0x13b   :  { %v403_v43 = vadd.f32 %v402_v50, %v401_v19 }
 0x13d   :  { %v404_v53 = vrot.slane %v403_v43, 2 }
 0x13f   :  { %v405_v20 = vadd.f32 %v404_v53, %v403_v43 }
 0x141   :  { %v406_v21 = vrot.slane %v405_v20, 1 }
 0x143   :  { %v407_v23 = vadd.f32 %v406_v21, %v405_v20 }
 0x145   :  { %v408_v24 = vmul.f32 0.0009765625, %v407_v23 }
 0x147   :  { %409 = vst [vmem:[#allocation4] sm:$0x1] %v408_v24 }
 0x155   :  { %v690_v62 = vpop.f32.mrf.mxu0  ;;  %v710_v25 = vpop.f32.mrf.mxu1 }
 0x156   :  { %v763_v16 = vsub.f32 %v690_v62, %v755_v15  ;;  %v764_v27 = vsub.f32 %v710_v25, %v756_v18 }
 0x158   :  { %v767_v22 = vmul.f32 %v763_v16, %v763_v16  ;;  %v768_v63 = vmul.f32 %v764_v27, %v764_v27 }
 0x15a   :  { %v730_v41 = vpop.f32.mrf.mxu2  ;;  %v750_v14 = vpop.f32.mrf.mxu3  ;;  %v771_v61 = vadd.f32 %v768_v63, %v767_v22 }
 0x15b   :  { %v765_v17 = vsub.f32 %v730_v41, %v757_v30  ;;  %v766_v35 = vsub.f32 %v750_v14, %v758_v0 }
 0x15d   :  { %v769_v36 = vmul.f32 %v765_v17, %v765_v17  ;;  %v770_v38 = vmul.f32 %v766_v35, %v766_v35 }
 0x15f   :  { %v772_v34 = vadd.f32 %v771_v61, %v769_v36 }
 0x161   :  { %v773_v57 = vadd.f32 %v772_v34, %v770_v38 }
 0x163   :  { %v774_v39 = vsel %vm400_vm1, %v773_v57, 0.0 }
 0x164   :  { %v775_v26 = vrot.slane %v774_v39, 4 }
 0x166   :  { %v776_v29 = vadd.f32 %v775_v26, %v774_v39 }
 0x168   :  { %v777_v42 = vrot.slane %v776_v29, 2 }
 0x16a   :  { %v778_v44 = vadd.f32 %v777_v42, %v776_v29 }
 0x16c   :  { %v779_v45 = vrot.slane %v778_v44, 1 }
 0x16e   :  { %v780_v46 = vadd.f32 %v779_v45, %v778_v44 }
 0x170   :  { %v781_v51 = vmul.f32 0.0009765625, %v780_v46 }
 0x172   :  { %783 = vst [vmem:[#allocation4 + $0x1] sm:$0x1] %v781_v51 }
 0x173   :  { %796 = dma.vmem_to_hbm [thread:$0]  %s789_s11, 32, %s791_s14, [#allocation5], %s889_s15, %s889_s15, %s890_s16  }
 0x174   :  { %884 = dma.done.wait [#allocation5], 32  }
 0x175   :  { %885 = vsyncadd [#allocation5], 4294967264 }
 0x176   :  { %801 = vsyncpa [#allocation5], 1 }

</bundles_post_ra>
